<compile_context>
chip_gen: v7x
topology: tpu7x:2x2x1
jax: 0.10.0
libtpu: 0.0.40
codegen_flags: <defaults>
</compile_context>

<pallas_src>
import functools

import jax
import jax.numpy as jnp
from jax.experimental import pallas as pl
from jax.experimental.pallas import tpu as pltpu

HIDDEN = 256          # relation head hidden width (Linear(2*ft, 256))
LEAKY_SLOPE = 0.01    # torch.nn.LeakyReLU default
BN_EPS = 1e-5         # torch.nn.BatchNorm1d default
N_TILE_MAX = 2048     # max pairs per grid step in the head kernel (multiple of 128)
VMEM_LIMIT = 48 * 1024 * 1024   # safe on v5e / v6e / v7x (v7x physical VMEM = 64 MiB)


def _round_up(x, m):
    return ((x + m - 1) // m) * m


# ---------------------------------------------------------------------------
# Kernel 1: AB = x @ [W1_top | W1_bot]   (tiled MXU matmul, f32 accumulation)
# ---------------------------------------------------------------------------
def _ab_matmul_kernel(x_ref, w_ref, o_ref):
    @pl.when(pl.program_id(1) == 0)
    def _():
        o_ref[...] = jnp.zeros_like(o_ref)

    o_ref[...] += jnp.dot(x_ref[...], w_ref[...],
                          preferred_element_type=jnp.float32)


def ab_matmul_pallas(x, w, *, mxu_dtype=jnp.float32):
    """x: (M, F), w: (F, P) -> (M, P) f32.  Zero-pads to tile multiples.

    mxu_dtype=jnp.bfloat16 can be used on v6e/v7x to halve HBM bytes and use the
    fast bf16 MXU path (accumulation stays f32); default f32 for exactness.
    """
    m, f = x.shape
    _, p_out = w.shape

    if m >= 512:
        tm = 512
    elif m >= 256:
        tm = 256
    else:
        tm = _round_up(m, 8)
    mp = _round_up(m, tm)

    tk = 512 if f >= 512 else _round_up(f, 128)
    fp = _round_up(f, tk)

    x_p = jnp.zeros((mp, fp), mxu_dtype).at[:m, :f].set(x.astype(mxu_dtype))
    w_p = jnp.zeros((fp, p_out), mxu_dtype).at[:f, :].set(w.astype(mxu_dtype))

    itemsize = x_p.dtype.itemsize
    cost = pl.CostEstimate(
        flops=2 * mp * fp * p_out,
        transcendentals=0,
        bytes_accessed=(mp * fp + fp * p_out) * itemsize + mp * p_out * 4,
    )
    out = pl.pallas_call(
        _ab_matmul_kernel,
        grid_spec=pltpu.PrefetchScalarGridSpec(
            num_scalar_prefetch=0,
            grid=(mp // tm, fp // tk),
            in_specs=[
                pl.BlockSpec((tm, tk), lambda i, k: (i, k)),
                pl.BlockSpec((tk, p_out), lambda i, k: (k, 0)),
            ],
            out_specs=pl.BlockSpec((tm, p_out), lambda i, k: (i, 0)),
        ),
        out_shape=jax.ShapeDtypeStruct((mp, p_out), jnp.float32),
        compiler_params=pltpu.CompilerParams(
            dimension_semantics=("parallel", "arbitrary"),
            vmem_limit_bytes=VMEM_LIMIT),
        cost_estimate=cost,
    )(x_p, w_p)
    return out[:m]


# ---------------------------------------------------------------------------
# Kernel 2: BatchNorm1d + LeakyReLU + Linear(256,1) + BCEWithLogits (mean)
#           grid = (phase, pair-tile); data layout = (256 features, pairs)
# ---------------------------------------------------------------------------
def _relation_head_kernel(b2_ref, h_ref, g_ref, be_ref, w2_ref,
                          scores_ref, loss_ref,
                          scale_ref, shift_ref, lacc_ref,
                          *, n_valid, n_pos, n_tile):
    p = pl.program_id(0)            # 0: BN statistics, 1: normalize/score/loss
    t = pl.program_id(1)            # pair-tile index
    last_t = pl.num_programs(1) - 1

    @pl.when(p == 0)
    def _stats_phase():
        @pl.when(t == 0)
        def _():
            scale_ref[...] = jnp.zeros_like(scale_ref)
            shift_ref[...] = jnp.zeros_like(shift_ref)

        h = h_ref[...]                                        # (256, NT)
        # padded columns are exactly zero -> contribute nothing to the sums
        scale_ref[...] += jnp.sum(h, axis=1, keepdims=True)        # sum
        shift_ref[...] += jnp.sum(h * h, axis=1, keepdims=True)    # sum of squares

        @pl.when(t == last_t)
        def _finalize():
            inv_n = 1.0 / float(n_valid)
            mean = scale_ref[...] * inv_n
            var = shift_ref[...] * inv_n - mean * mean        # biased (training BN)
            inv_std = jax.lax.rsqrt(var + BN_EPS)
            scale = g_ref[...] * inv_std
            shift = be_ref[...] - mean * scale
            scale_ref[...] = scale                            # scratch reuse: BN scale
            shift_ref[...] = shift                            # scratch reuse: BN shift

    @pl.when(p == 1)
    def _score_phase():
        @pl.when(t == 0)
        def _():
            lacc_ref[0] = jnp.float32(0.0)

        h = h_ref[...]                                        # (256, NT)
        hn = h * scale_ref[...] + shift_ref[...]              # fused BN affine
        hn = jnp.where(hn >= 0.0, hn, LEAKY_SLOPE * hn)       # LeakyReLU(0.01)
        # Linear(256, 1) as VPU multiply + sublane reduction -> lane-dense scores
        s = jnp.sum(hn * w2_ref[...], axis=0, keepdims=True) + b2_ref[0]   # (1, NT)
        scores_ref[...] = s

        # targets / valid mask from global pair index (positive pairs come first)
        lidx = jax.lax.broadcasted_iota(jnp.int32, s.shape, 1)
        pidx = t * n_tile + lidx
        tgt = (pidx < n_pos).astype(jnp.float32)
        valid = (pidx < n_valid).astype(jnp.float32)

        # BCE-with-logits (numerically stable form), sum accumulated in SMEM
        bce = jnp.maximum(s, 0.0) - s * tgt + jnp.log1p(jnp.exp(-jnp.abs(s)))
        lacc_ref[0] += jnp.sum(bce * valid)

        @pl.when(t == last_t)
        def _():
            loss_ref[...] = (lacc_ref[0] / float(n_valid))[None, None]


def relation_head_pallas(h_pre, gamma, beta, w2, b2, *, n_pos):
    """h_pre: (N, 256) pre-BatchNorm hidden rows.  Returns (loss, scores(N,))."""
    n, hdim = h_pre.shape
    n_tile = min(N_TILE_MAX, max(128, _round_up(n, 128)))
    n_pad = _round_up(max(n, 1), n_tile)
    nt = n_pad // n_tile

    # transposed, zero-padded layout: features on sublanes, pairs on lanes
    h_t = jnp.zeros((hdim, n_pad), jnp.float32).at[:, :n].set(
        h_pre.astype(jnp.float32).T)
    g_c = gamma.reshape(hdim, 1).astype(jnp.float32)
    be_c = beta.reshape(hdim, 1).astype(jnp.float32)
    w2_c = w2.reshape(hdim, 1).astype(jnp.float32)
    b2_s = b2.reshape(1).astype(jnp.float32)

    kernel = functools.partial(_relation_head_kernel, n_valid=n, n_pos=n_pos,
                               n_tile=n_tile)
    cost = pl.CostEstimate(
        flops=12 * n_pad * hdim,
        transcendentals=2 * n_pad,
        bytes_accessed=2 * n_pad * hdim * 4 + n_pad * 4,
    )
    # scores index map (0, p*t): during the stats phase (p==0) the block stays
    # resident (no uninitialised writebacks); during the score phase (p==1) each
    # tile is written exactly once with valid data.
    scores_row, loss11 = pl.pallas_call(
        kernel,
        grid_spec=pltpu.PrefetchScalarGridSpec(
            num_scalar_prefetch=1,                            # b2 -> SMEM scalar
            grid=(2, nt),                                     # (phase, pair tile)
            in_specs=[
                pl.BlockSpec((hdim, n_tile), lambda p, t, b2s: (0, t)),   # h tile
                pl.BlockSpec((hdim, 1), lambda p, t, b2s: (0, 0)),        # gamma
                pl.BlockSpec((hdim, 1), lambda p, t, b2s: (0, 0)),        # beta
                pl.BlockSpec((hdim, 1), lambda p, t, b2s: (0, 0)),        # w2
            ],
            out_specs=[
                pl.BlockSpec((1, n_tile), lambda p, t, b2s: (0, p * t)),  # scores
                pl.BlockSpec((1, 1), lambda p, t, b2s: (0, 0)),           # loss
            ],
            scratch_shapes=[
                pltpu.VMEM((hdim, 1), jnp.float32),   # feature sums  -> BN scale
                pltpu.VMEM((hdim, 1), jnp.float32),   # feature sumsq -> BN shift
                pltpu.SMEM((1,), jnp.float32),        # BCE sum accumulator
            ],
        ),
        out_shape=(jax.ShapeDtypeStruct((1, n_pad), jnp.float32),
                   jax.ShapeDtypeStruct((1, 1), jnp.float32)),
        compiler_params=pltpu.CompilerParams(
            dimension_semantics=("arbitrary", "arbitrary"),
            vmem_limit_bytes=VMEM_LIMIT),
        cost_estimate=cost,
    )(b2_s, h_t, g_c, be_c, w2_c)
    return loss11[0, 0], scores_row[0, :n]


# ------------------------------ plain-JAX glue -------------------------------
def _pair_indices(bs, K):
    """Static row indices into the flattened (bs*K, ft) features, matching
    RelationalReasoning.aggregate_cat exactly: positive pairs first, then negative."""
    a_pos, b_pos, a_neg, b_neg = [], [], [], []
    shifts = 1
    for i in range(K):
        for j in range(i + 1, K):
            for b in range(bs):
                a_pos.append(b * K + i)
                b_pos.append(b * K + j)
            for b in range(bs):
                a_neg.append(b * K + i)
                b_neg.append(((b - shifts) % bs) * K + j)     # roll(shifts, dims=0)
            shifts += 1
            if shifts >= bs:
                shifts = 1
    return a_pos + a_neg, b_pos + b_neg


def pretrain_loss_forward(features, params, *, mxu_dtype=jnp.float32):
    """PretrainLoss.forward for loss_type='sssl' (RelationalReasoning + BCE)."""
    bs, K, ft = features.shape
    w1, b1, gamma, beta, w2, b2 = params
    del b1  # exactly cancelled by the training-mode BatchNorm mean subtraction

    a_idx, b_idx = _pair_indices(bs, K)
    n_pairs = len(a_idx)
    n_pos = n_pairs // 2

    # A | B = x @ [W1_top | W1_bot] over the bs*K unique feature rows
    x = features.reshape(bs * K, ft)
    w1_cat = jnp.concatenate([w1[:ft, :], w1[ft:, :]], axis=1)      # (ft, 512)
    ab = ab_matmul_pallas(x, w1_cat, mxu_dtype=mxu_dtype)           # (bs*K, 512) f32

    a_ids = jnp.asarray(a_idx, dtype=jnp.int32)
    b_ids = jnp.asarray(b_idx, dtype=jnp.int32)
    # cheap (N, 256) gather/add replaces the (N, 2*ft) pairs tensor entirely
    h_pre = ab[a_ids, :HIDDEN] + ab[b_ids, HIDDEN:]

    loss, scores = relation_head_pallas(h_pre, gamma, beta, w2, b2, n_pos=n_pos)

    tgt = jnp.concatenate([jnp.ones((n_pos,), jnp.float32),
                           jnp.zeros((n_pairs - n_pos,), jnp.float32)])
    correct = [(scores > thr / 10.0).astype(jnp.float32) == tgt
               for thr in range(1, 10)]
    # LossOutput equivalent: (loss, scores, correct)
    return loss, scores, correct


def init_relation_head_params(key, ft):
    """Deterministic init of Linear(2*ft,256) / BatchNorm1d(256) / Linear(256,1)."""
    k1, k2, k3, k4 = jax.random.split(key, 4)
    f2 = 2 * ft
    lim1 = 1.0 / jnp.sqrt(f2)
    lim2 = 1.0 / jnp.sqrt(HIDDEN)
    w1 = jax.random.uniform(k1, (f2, HIDDEN), jnp.float32, -lim1, lim1)
    b1 = jax.random.uniform(k2, (1, HIDDEN), jnp.float32, -lim1, lim1)
    gamma = jnp.ones((1, HIDDEN), jnp.float32)
    beta = jnp.zeros((1, HIDDEN), jnp.float32)
    w2 = jax.random.uniform(k3, (HIDDEN, 1), jnp.float32, -lim2, lim2)
    b2 = jax.random.uniform(k4, (1, 1), jnp.float32, -lim2, lim2)
    return (w1, b1, gamma, beta, w2, b2)


# ------------------------- pure-JAX reference check --------------------------
def _aggregate_cat_reference(features):
    bs, K, ft = features.shape
    pos_pairs, neg_pairs = [], []
    shifts = 1
    for i in range(K):
        for j in range(i + 1, K):
            pos_pairs.append(jnp.concatenate([features[:, i], features[:, j]], axis=1))
            rolled = jnp.roll(features, shifts, axis=0)
            neg_pairs.append(jnp.concatenate([features[:, i], rolled[:, j]], axis=1))
            shifts += 1
            if shifts >= bs:
                shifts = 1
    ppt = jnp.concatenate(pos_pairs, axis=0)
    npt = jnp.concatenate(neg_pairs, axis=0)
    all_pairs = jnp.concatenate([ppt, npt], axis=0)
    tgt = jnp.concatenate([jnp.ones((ppt.shape[0],), jnp.float32),
                           jnp.zeros((npt.shape[0],), jnp.float32)], axis=0)
    return all_pairs, tgt


def _reference(features, params):
    pairs, tgt = _aggregate_cat_reference(features)
    w1, b1, gamma, beta, w2, b2 = params
    h = pairs @ w1 + b1
    mean = jnp.mean(h, axis=0, keepdims=True)
    var = jnp.mean((h - mean) ** 2, axis=0, keepdims=True)
    h = (h - mean) / jnp.sqrt(var + BN_EPS) * gamma + beta
    h = jnp.where(h >= 0, h, LEAKY_SLOPE * h)
    s = (h @ w2 + b2)[:, 0]
    bce = jnp.maximum(s, 0.0) - s * tgt + jnp.log1p(jnp.exp(-jnp.abs(s)))
    return jnp.mean(bce), s


if __name__ == "__main__":
    key = jax.random.PRNGKey(0)
    k_feat, k_params = jax.random.split(key)

    bs, K, ft = 2, 4, 32            # small shapes consistent with (bs, K, feature_size)
    features = jax.random.normal(k_feat, (bs, K, ft), jnp.float32)
    params = init_relation_head_params(k_params, ft)

    loss, scores, correct = pretrain_loss_forward(features, params)
    jax.block_until_ready((loss, scores, correct))

    ref_loss, ref_scores = _reference(features, params)
    assert jnp.allclose(loss, ref_loss, atol=2e-4, rtol=2e-4), (loss, ref_loss)
    assert jnp.allclose(scores, ref_scores, atol=2e-4, rtol=2e-4)

    print("KERNEL_OK")
</pallas_src>

<mosaic_0001>
module attributes {stable_mosaic.version = 11 : i64} {
  func.func @_ab_matmul_kernel(%arg0: i32, %arg1: i32, %arg2: memref<8x128xf32, #tpu.memory_space<vmem>>, %arg3: memref<128x512xf32, #tpu.memory_space<vmem>>, %arg4: memref<8x512xf32, #tpu.memory_space<vmem>>) attributes {dimension_semantics = [#tpu.dimension_semantics<parallel>, #tpu.dimension_semantics<arbitrary>], iteration_bounds = array<i64: 1, 1>, scalar_prefetch = 0 : i64, scratch_operands = 0 : i64, tpu.core_type = #tpu.core_type<tc>, window_params = [{transform_indices = @transform_0, window_bounds = array<i64: 8, 128>}, {transform_indices = @transform_1, window_bounds = array<i64: 128, 512>}, {transform_indices = @transform_2, window_bounds = array<i64: 8, 512>}]} {
    %c0_i32 = arith.constant 0 : i32
    %0 = arith.cmpi eq, %arg1, %c0_i32 : i32
    %1 = arith.extui %0 : i1 to i32
    %c0_i32_0 = arith.constant 0 : i32
    %2 = arith.cmpi ne, %1, %c0_i32_0 : i32
    scf.if %2 {
      %cst_8 = arith.constant 0.000000e+00 : f32
      %9 = vector.broadcast %cst_8 : f32 to vector<8x512xf32>
      %c0_9 = arith.constant 0 : index
      %c0_10 = arith.constant 0 : index
      %10 = vector.load %arg4[%c0_9, %c0_10] : memref<8x512xf32, #tpu.memory_space<vmem>>, vector<8x512xf32>
      tpu.vector_store %arg4[%c0_9, %c0_10], %9 {strides = array<i32>} : memref<8x512xf32, #tpu.memory_space<vmem>>, vector<8x512xf32>,
    } else {
    }
    %c0 = arith.constant 0 : index
    %c0_1 = arith.constant 0 : index
    %3 = vector.load %arg4[%c0, %c0_1] : memref<8x512xf32, #tpu.memory_space<vmem>>, vector<8x512xf32>
    %c0_2 = arith.constant 0 : index
    %c0_3 = arith.constant 0 : index
    %4 = vector.load %arg2[%c0_2, %c0_3] : memref<8x128xf32, #tpu.memory_space<vmem>>, vector<8x128xf32>
    %c0_4 = arith.constant 0 : index
    %c0_5 = arith.constant 0 : index
    %5 = vector.load %arg3[%c0_4, %c0_5] : memref<128x512xf32, #tpu.memory_space<vmem>>, vector<128x512xf32>
    %cst = arith.constant dense<0.000000e+00> : vector<8x512xf32>
    %6 = tpu.matmul %4, %5, %cst {dimension_numbers = #tpu.dot_dimension_numbers<[1], [0], [0], [1], [0, 0, 1, 1], [], []>} : vector<8x128xf32>, vector<128x512xf32>, vector<8x512xf32> -> vector<8x512xf32>
    %7 = arith.addf %3, %6 : vector<8x512xf32>
    %c0_6 = arith.constant 0 : index
    %c0_7 = arith.constant 0 : index
    %8 = vector.load %arg4[%c0_6, %c0_7] : memref<8x512xf32, #tpu.memory_space<vmem>>, vector<8x512xf32>
    tpu.vector_store %arg4[%c0_6, %c0_7], %7 {strides = array<i32>} : memref<8x512xf32, #tpu.memory_space<vmem>>, vector<8x512xf32>,
    return
  }
  func.func @transform_0(%arg0: i32, %arg1: i32) -> (i32, i32) {
    %c0_i32 = arith.constant 0 : i32
    return %arg0, %arg1 : i32, i32
  }
  func.func @transform_1(%arg0: i32, %arg1: i32) -> (i32, i32) {
    %c0_i32 = arith.constant 0 : i32
    %c0_i32_0 = arith.constant 0 : i32
    return %arg1, %c0_i32 : i32, i32
  }
  func.func @transform_2(%arg0: i32, %arg1: i32) -> (i32, i32) {
    %c0_i32 = arith.constant 0 : i32
    %c0_i32_0 = arith.constant 0 : i32
    return %arg0, %c0_i32 : i32, i32
  }
}

</mosaic_0001>

<bundles_post_ra>
// kernel: tpu_custom_call.1
= control target key start
LH: loop header
LB: loop body
LE: loop exit
PB: predicated region body
PF: predicated region fallthrough
CT: control target
= control target key end

     0   :  { %7 = vsyncpa [#allocation3], 0  ;;  %s487_s0 = inlined_call_operand.hbm [shape: f32[8,128], index: 0, kind: input, shape index: {}]   ;;  %s488_s1 = inlined_call_operand.hbm [shape: f32[128,512], index: 1, kind: input, shape index: {}]   ;;  %s489_s2 = inlined_call_operand.hbm [shape: f32[8,512], index: 2, kind: output, shape index: {}]  }
   0x1   :  { %8 = vsyncpa [#allocation6], 0 }
   0x2   :  { %9 = vsyncpa [#allocation4], 0  ;;  %s423_s9 = smov [#allocation2]   ;;  %s424_s11 = smov [#allocation5]  }
   0x3   :  { %s16_s10 = sshll.u32 %s423_s9, 4  ;;  %s25_s12 = sshll.u32 %s424_s11, 4  ;;  %s17_s10 = int_to_ptr.vmem [resolvable:$true] %s16_s10  ;;  %s444_s12 = int_to_ptr.vmem [resolvable:$true] %s25_s12 }
   0x4   :  { %s351_s15 = scalar_lea.hbm %s487_s0, 128 }
   0x5   :  { %p352_p0 = scmp.ne.s32.totalorder %s487_s0, %s351_s15  ;;  %p355_p1 = scmp.lt.u32.totalorder %s351_s15, %s487_s0 }
   0x7   :  { %p357_p2 = pnand %p355_p1, %p352_p0 }
   0x9   :  { %360 = shalt.err (!%p357_p2)
}
   0xa   :  { %s361_s20 = scalar_lea.vmem %s17_s10, 128  ;;  %p366_p4 = scmp.lt.s32.totalorder %s17_s10, %s17_s10 }
   0xb   :  { %p362_p3 = scmp.ne.s32.totalorder %s17_s10, %s361_s20  ;;  %p367_p5 = scmp.lt.s32.totalorder %s361_s20, %s361_s20 }
   0xd   :  { %p368_p6 = por %p367_p5, %p366_p4 }
   0xf   :  { %p369_p7 = pnand %p368_p6, %p362_p3 }
  0x11   :  { %372 = shalt.err (!%p369_p7)
}
  0x12   :  { %19 = dma.hbm_to_vmem [thread:$0]  %s487_s0, 128, %s17_s10, [#allocation3]  }
  0x13   :  { %s373_s25 = scalar_lea.hbm %s488_s1, 8192 }
  0x14   :  { %p374_p8 = scmp.ne.s32.totalorder %s488_s1, %s373_s25  ;;  %p377_p9 = scmp.lt.u32.totalorder %s373_s25, %s488_s1 }
  0x16   :  { %p379_p10 = pnand %p377_p9, %p374_p8 }
  0x18   :  { %382 = shalt.err (!%p379_p10)
}
  0x19   :  { %s383_s30 = scalar_lea.vmem %s444_s12, 8192  ;;  %p388_p12 = scmp.lt.s32.totalorder %s444_s12, %s444_s12 }
  0x1a   :  { %p384_p11 = scmp.ne.s32.totalorder %s444_s12, %s383_s30  ;;  %p389_p13 = scmp.lt.s32.totalorder %s383_s30, %s383_s30 }
  0x1c   :  { %p390_p0 = por %p389_p13, %p388_p12 }
  0x1e   :  { %p391_p1 = pnand %p390_p0, %p384_p11 }
  0x20   :  { %394 = shalt.err (!%p391_p1)
}
  0x21   :  { %s425_s0 = smov 512   ;;  %s426_s3 = smov 32  }
  0x22   :  { %31 = dma.hbm_to_vmem [thread:$0]  %s488_s1, 8192, %s444_s12, [#allocation6], %s425_s0, %s425_s0, %s426_s3  }
  0x23   :  { %417 = dma.done.wait [#allocation3], 128  }
  0x24   :  { %418 = vsyncadd [#allocation3], 4294967168 }
  0x25   :  { %419 = dma.done.wait [#allocation6], 8192  }
  0x26   :  { %420 = vsyncadd [#allocation6], 4294959104  ;;  %v427_v0 = vmov 0.0   ;;  %v52_v1 = vld [vmem:[#allocation5 + $0x8] sm:$0xff]  ;;  %v54_v3 = vld [vmem:[#allocation5 + $0x18] sm:$0xff]  ;;  %s428_s1 = smov [#allocation7]  }
  0x27   :  { %179 = vmatprep.mubr.f32.mxu0 %v427_v0  ;;  %250 = vmatprep.mubr.f32.mxu1 %v427_v0  ;;  %v56_v2 = vld [vmem:[#allocation5 + $0x28] sm:$0xff]  ;;  %v58_v5 = vld [vmem:[#allocation5 + $0x38] sm:$0xff]  ;;  %v51_v6 = vld [vmem:[#allocation5] sm:$0xff]  ;;  %s271_s6 = sshll.u32 %s428_s1, 4  ;;  %s272_s6 = int_to_ptr.vmem [resolvable:$true] %s271_s6 }
  0x28   :  { %v281_v4 = vpack.c.bf16 %v56_v2, %v52_v1  ;;  %v55_v7 = vld [vmem:[#allocation5 + $0x20] sm:$0xff]  ;;  %v313_v8 = vpack.c.bf16 %v58_v5, %v54_v3  ;;  %v53_v10 = vld [vmem:[#allocation5 + $0x10] sm:$0xff]  ;;  %v60_v12 = vld [vmem:[#allocation5 + $0x48] sm:$0xff]  ;;  %s395_s7 = scalar_lea.vmem %s272_s6, 512  ;;  %p400_p3 = scmp.lt.s32.totalorder %s272_s6, %s272_s6 }
  0x29   :  { %v283_v9 = vpack.c.bf16 %v55_v7, %v51_v6  ;;  %v57_v11 = vld [vmem:[#allocation5 + $0x30] sm:$0xff]  ;;  %v64_v14 = vld [vmem:[#allocation5 + $0x68] sm:$0xff]  ;;  %v62_v15 = vld [vmem:[#allocation5 + $0x58] sm:$0xff]  ;;  %p396_p2 = scmp.ne.s32.totalorder %s272_s6, %s395_s7  ;;  %p401_p4 = scmp.lt.s32.totalorder %s395_s7, %s395_s7 }
  0x2a   :  { %282 = vmatprep.subr.bf16.mxu0 %v281_v4  ;;  %v315_v13 = vpack.c.bf16 %v57_v11, %v53_v10  ;;  %v66_v16 = vld [vmem:[#allocation5 + $0x78] sm:$0xff]  ;;  %314 = vmatprep.subr.bf16.mxu1 %v313_v8  ;;  %v285_v17 = vpack.c.bf16 %v64_v14, %v60_v12  ;;  %v59_v19 = vld [vmem:[#allocation5 + $0x40] sm:$0xff]  ;;  %v61_v21 = vld [vmem:[#allocation5 + $0x50] sm:$0xff] }
  0x2b   :  { %284 = vmatpush1.bf16.msra.mxu0 %v283_v9  ;;  %v317_v18 = vpack.c.bf16 %v66_v16, %v62_v15  ;;  %v63_v20 = vld [vmem:[#allocation5 + $0x60] sm:$0xff]  ;;  %v65_v23 = vld [vmem:[#allocation5 + $0x70] sm:$0xff]  ;;  %v68_v24 = vld [vmem:[#allocation5 + $0x88] sm:$0xff]  ;;  %p402_p5 = por %p401_p4, %p400_p3 }
  0x2c   :  { %316 = vmatpush1.bf16.msra.mxu1 %v315_v13  ;;  %v287_v22 = vpack.c.bf16 %v63_v20, %v59_v19  ;;  %v72_v25 = vld [vmem:[#allocation5 + $0xa8] sm:$0xff]  ;;  %286 = vmatprep.subr.bf16.mxu0 %v285_v17  ;;  %v319_v26 = vpack.c.bf16 %v65_v23, %v61_v21  ;;  %v70_v28 = vld [vmem:[#allocation5 + $0x98] sm:$0xff]  ;;  %v67_v30 = vld [vmem:[#allocation5 + $0x80] sm:$0xff] }
  0x2d   :  { %318 = vmatprep.subr.bf16.mxu1 %v317_v18  ;;  %v289_v27 = vpack.c.bf16 %v72_v25, %v68_v24  ;;  %v74_v29 = vld [vmem:[#allocation5 + $0xb8] sm:$0xff]  ;;  %v71_v32 = vld [vmem:[#allocation5 + $0xa0] sm:$0xff]  ;;  %v69_v33 = vld [vmem:[#allocation5 + $0x90] sm:$0xff]  ;;  %p403_p6 = pnand %p402_p5, %p396_p2 }
  0x2e   :  { %v321_v31 = vpack.c.bf16 %v74_v29, %v70_v28  ;;  %v73_v34 = vld [vmem:[#allocation5 + $0xb0] sm:$0xff]  ;;  %v291_v35 = vpack.c.bf16 %v71_v32, %v67_v30  ;;  %v76_v36 = vld [vmem:[#allocation5 + $0xc8] sm:$0xff]  ;;  %v78_v38 = vld [vmem:[#allocation5 + $0xd8] sm:$0xff] }
  0x2f   :  { %288 = vmatpush1.bf16.msra.mxu0 %v287_v22  ;;  %v80_v37 = vld [vmem:[#allocation5 + $0xe8] sm:$0xff]  ;;  %v323_v39 = vpack.c.bf16 %v73_v34, %v69_v33  ;;  %v82_v41 = vld [vmem:[#allocation5 + $0xf8] sm:$0xff]  ;;  %v75_v42 = vld [vmem:[#allocation5 + $0xc0] sm:$0xff] }
  0x30   :  { %320 = vmatpush1.bf16.msra.mxu1 %v319_v26  ;;  %290 = vmatprep.subr.bf16.mxu0 %v289_v27  ;;  %v293_v40 = vpack.c.bf16 %v80_v37, %v76_v36  ;;  %v79_v43 = vld [vmem:[#allocation5 + $0xe0] sm:$0xff]  ;;  %v325_v44 = vpack.c.bf16 %v82_v41, %v78_v38  ;;  %v77_v45 = vld [vmem:[#allocation5 + $0xd0] sm:$0xff]  ;;  %v84_v47 = vld [vmem:[#allocation5 + $0x108] sm:$0xff] }
  0x31   :  { %322 = vmatprep.subr.bf16.mxu1 %v321_v31  ;;  %v81_v46 = vld [vmem:[#allocation5 + $0xf0] sm:$0xff]  ;;  %v88_v48 = vld [vmem:[#allocation5 + $0x128] sm:$0xff]  ;;  %v86_v49 = vld [vmem:[#allocation5 + $0x118] sm:$0xff]  ;;  %v295_v51 = vpack.c.bf16 %v79_v43, %v75_v42 }
  0x32   :  { %v90_v50 = vld [vmem:[#allocation5 + $0x138] sm:$0xff]  ;;  %v327_v52 = vpack.c.bf16 %v81_v46, %v77_v45  ;;  %v297_v53 = vpack.c.bf16 %v88_v48, %v84_v47  ;;  %v83_v54 = vld [vmem:[#allocation5 + $0x100] sm:$0xff]  ;;  %v85_v56 = vld [vmem:[#allocation5 + $0x110] sm:$0xff] }
  0x33   :  { %292 = vmatpush1.bf16.msra.mxu0 %v291_v35  ;;  %v87_v55 = vld [vmem:[#allocation5 + $0x120] sm:$0xff]  ;;  %v329_v57 = vpack.c.bf16 %v90_v50, %v86_v49  ;;  %v89_v58 = vld [vmem:[#allocation5 + $0x130] sm:$0xff]  ;;  %v92_v59 = vld [vmem:[#allocation5 + $0x148] sm:$0xff] }
  0x34   :  { %324 = vmatpush1.bf16.msra.mxu1 %v323_v39  ;;  %294 = vmatprep.subr.bf16.mxu0 %v293_v40  ;;  %v96_v60 = vld [vmem:[#allocation5 + $0x168] sm:$0xff]  ;;  %v94_v61 = vld [vmem:[#allocation5 + $0x158] sm:$0xff]  ;;  %v299_v63 = vpack.c.bf16 %v87_v55, %v83_v54  ;;  %v331_v0 = vpack.c.bf16 %v89_v58, %v85_v56  ;;  %v91_v2 = vld [vmem:[#allocation5 + $0x140] sm:$0xff] }
  0x35   :  { %326 = vmatprep.subr.bf16.mxu1 %v325_v44  ;;  %v98_v62 = vld [vmem:[#allocation5 + $0x178] sm:$0xff]  ;;  %v301_v1 = vpack.c.bf16 %v96_v60, %v92_v59  ;;  %v95_v3 = vld [vmem:[#allocation5 + $0x160] sm:$0xff]  ;;  %v93_v4 = vld [vmem:[#allocation5 + $0x150] sm:$0xff] }
  0x36   :  { %v333_v5 = vpack.c.bf16 %v98_v62, %v94_v61  ;;  %v97_v6 = vld [vmem:[#allocation5 + $0x170] sm:$0xff]  ;;  %v100_v7 = vld [vmem:[#allocation5 + $0x188] sm:$0xff]  ;;  %v102_v9 = vld [vmem:[#allocation5 + $0x198] sm:$0xff]  ;;  %v303_v11 = vpack.c.bf16 %v95_v3, %v91_v2 }
  0x37   :  { %296 = vmatpush1.bf16.msra.mxu0 %v295_v51  ;;  %v104_v8 = vld [vmem:[#allocation5 + $0x1a8] sm:$0xff]  ;;  %v106_v10 = vld [vmem:[#allocation5 + $0x1b8] sm:$0xff]  ;;  %v335_v12 = vpack.c.bf16 %v97_v6, %v93_v4  ;;  %v99_v14 = vld [vmem:[#allocation5 + $0x180] sm:$0xff] }
  0x38   :  { %328 = vmatpush1.bf16.msra.mxu1 %v327_v52  ;;  %298 = vmatprep.subr.bf16.mxu0 %v297_v53  ;;  %v305_v13 = vpack.c.bf16 %v104_v8, %v100_v7  ;;  %v103_v15 = vld [vmem:[#allocation5 + $0x1a0] sm:$0xff]  ;;  %v101_v16 = vld [vmem:[#allocation5 + $0x190] sm:$0xff]  ;;  %v337_v17 = vpack.c.bf16 %v106_v10, %v102_v9  ;;  %v108_v19 = vld [vmem:[#allocation5 + $0x1c8] sm:$0xff] }
  0x39   :  { %330 = vmatprep.subr.bf16.mxu1 %v329_v57  ;;  %v105_v18 = vld [vmem:[#allocation5 + $0x1b0] sm:$0xff]  ;;  %v112_v20 = vld [vmem:[#allocation5 + $0x1e8] sm:$0xff]  ;;  %v110_v21 = vld [vmem:[#allocation5 + $0x1d8] sm:$0xff]  ;;  %v307_v23 = vpack.c.bf16 %v103_v15, %v99_v14 }
  0x3a   :  { %v114_v22 = vld [vmem:[#allocation5 + $0x1f8] sm:$0xff]  ;;  %v339_v24 = vpack.c.bf16 %v105_v18, %v101_v16  ;;  %v309_v25 = vpack.c.bf16 %v112_v20, %v108_v19  ;;  %v107_v26 = vld [vmem:[#allocation5 + $0x1c0] sm:$0xff]  ;;  %v109_v29 = vld [vmem:[#allocation5 + $0x1d0] sm:$0xff] }
  0x3b   :  { %300 = vmatpush1.bf16.msra.mxu0 %v299_v63  ;;  %v111_v27 = vld [vmem:[#allocation5 + $0x1e0] sm:$0xff]  ;;  %v341_v28 = vpack.c.bf16 %v114_v22, %v110_v21  ;;  %v113_v30 = vld [vmem:[#allocation5 + $0x1f0] sm:$0xff]  ;;  %v50_v33 = vld [vmem:[#allocation2] sm:$0xff] }
  0x3c   :  { %332 = vmatpush1.bf16.msra.mxu1 %v331_v0  ;;  %302 = vmatprep.subr.bf16.mxu0 %v301_v1  ;;  %v311_v31 = vpack.c.bf16 %v111_v27, %v107_v26  ;;  %v343_v32 = vpack.c.bf16 %v113_v30, %v109_v29 }
  0x3d   :  { %334 = vmatprep.subr.bf16.mxu1 %v333_v5 }
  0x3f   :  { %304 = vmatpush1.bf16.msra.mxu0 %v303_v11 }
  0x40   :  { %336 = vmatpush1.bf16.msra.mxu1 %v335_v12  ;;  %306 = vmatprep.subr.bf16.mxu0 %v305_v13 }
  0x41   :  { %338 = vmatprep.subr.bf16.mxu1 %v337_v17 }
  0x43   :  { %308 = vmatpush1.bf16.msra.mxu0 %v307_v23 }
  0x44   :  { %340 = vmatpush1.bf16.msra.mxu1 %v339_v24  ;;  %310 = vmatprep.subr.bf16.mxu0 %v309_v25 }
  0x45   :  { %342 = vmatprep.subr.bf16.mxu1 %v341_v28 }
  0x47   :  { %312 = vmatpush1.bf16.msra.mxu0 %v311_v31 }
  0x48   :  { %344 = vmatpush1.bf16.msra.mxu1 %v343_v32 }
  0x4a   :  { %180 = vmatmul.mubr.f32.vlgmr.msra.gmra.mrb[0].mxu0 %v50_v33 }
  0x4b   :  { %251 = vmatmul.mubr.f32.vlgmr.msra.gmra.mrb[0].mxu1 %v50_v33 }
 0x11d   :  { %v181_v34 = vpop.f32.mrb[0].mxu0 }
 0x11e   :  { %v252_v35 = vpop.f32.mrb[0].mxu1  ;;  %v183_v36 = vpop.f32.mrb[1].mxu0  ;;  %261 = vst [vmem:[#allocation7] sm:$0xff] %v181_v34 }
 0x11f   :  { %v254_v37 = vpop.f32.mrb[1].mxu1  ;;  %263 = vst [vmem:[#allocation7 + $0x10] sm:$0xff] %v252_v35  ;;  %262 = vst [vmem:[#allocation7 + $0x8] sm:$0xff] %v183_v36 }
 0x120   :  { %264 = vst [vmem:[#allocation7 + $0x18] sm:$0xff] %v254_v37 }
 0x121   :  { %406 = shalt.err (!%p403_p6)
}
 0x122   :  { %s407_s10 = scalar_lea.hbm %s489_s2, 512 }
 0x123   :  { %p408_p7 = scmp.ne.s32.totalorder %s489_s2, %s407_s10  ;;  %p411_p8 = scmp.lt.u32.totalorder %s407_s10, %s489_s2 }
 0x125   :  { %p413_p9 = pnand %p411_p8, %p408_p7 }
 0x127   :  { %416 = shalt.err (!%p413_p9)
}
 0x128   :  { %274 = dma.vmem_to_hbm [thread:$0]  %s272_s6, 512, %s489_s2, [#allocation4]  }
 0x129   :  { %421 = dma.done.wait [#allocation4], 512  }
 0x12a   :  { %422 = vsyncadd [#allocation4], 4294966784 }
 0x12b   :  { %278 = vsyncpa [#allocation3], 1 }
 0x12c   :  { %279 = vsyncpa [#allocation6], 1 }
 0x12d   :  { %280 = vsyncpa [#allocation4], 1 }

</bundles_post_ra>
